<compile_context>
chip_gen: v7x
topology: tpu7x:2x2x1
jax: 0.10.0
libtpu: 0.0.40
codegen_flags: <defaults>
</compile_context>

<pallas_src>
import functools

import numpy as np
import jax
import jax.numpy as jnp
from jax.experimental import pallas as pl
from jax.experimental.pallas import tpu as pltpu

TOP_K = 3
NEG_BIG = -1e30
LANE = 128
SUBLANE = 8
_SIGN_CLEAR = 0x7FFFFFFF               # int32: flip all bits except the sign bit
_INT32_MIN = np.int32(np.iinfo(np.int32).min)


def _round_up(x, m):
    return ((x + m - 1) // m) * m


def _row_tile_cap():
    # 256-wide MXUs on v6e / v7x; 128 on v5e (and older / unknown chips).
    try:
        kind = jax.devices()[0].device_kind.lower()
    except Exception:
        return 128
    return 256 if ("v6" in kind or "v7" in kind) else 128


def _to_sortable(bits):
    """int32 bit pattern of an f32 -> int32 whose signed order == float order."""
    return jnp.where(bits >= 0, bits, bits ^ _SIGN_CLEAR)


def _from_sortable(key):
    return jnp.where(key >= 0, key, key ^ _SIGN_CLEAR)


def embedding_transformer_kernel(new_ref, exist_ref, rexn_ref, w_ref, b_ref,
                                 out_ref, *, n_ex_valid, n_ex_total, idx_bits):
    new = new_ref[...]            # (tm,       D_pad) f32
    exist = exist_ref[...]        # (N_ex_pad, D_pad) f32

    # ---- cosine similarity --------------------------------------------------
    # Contract on the last dim of both operands: no materialized exist.T.
    dots = jax.lax.dot_general(new, exist, (((1,), (1,)), ((), ())),
                               preferred_element_type=jnp.float32)   # (tm, N_ex_pad)
    ssq = jnp.sum(new * new, axis=1, keepdims=True)                  # (tm, 1)
    recip_new = jax.lax.rsqrt(jnp.maximum(ssq, 1e-30))               # per-row scale
    # exist norms are grid-invariant: precomputed (1, N_ex_pad) reciprocal row.
    sim = dots * rexn_ref[...] * recip_new                           # (tm, N_ex_pad)

    n_rows, n_cols = sim.shape
    col_ids = jax.lax.broadcasted_iota(jnp.int32, (n_rows, n_cols), 1)
    if n_ex_valid < n_ex_total:          # static (trace-time) padding mask
        sim = jnp.where(col_ids < n_ex_valid, sim, NEG_BIG)

    # ---- top-3 selection: ONE cross-lane reduction per pick -----------------
    # Pack a descending column code into the low `idx_bits` bits of a sortable
    # int32 key; a single row-max then selects the first-occurrence max column
    # AND carries its (quantized) similarity value.
    # NOTE: for very large n_ex, switch to a streamed column-tile top-3 so
    # idx_bits (and the value quantization) stays small.
    idx_mask = (1 << idx_bits) - 1
    hi_mask = ~idx_mask                                             # int32-safe
    key = (_to_sortable(pltpu.bitcast(sim, jnp.int32)) & hi_mask) | \
          (idx_mask - col_ids)

    wmat = jnp.zeros((n_rows, n_cols), jnp.float32)   # top-3 gather weights
    wsum = jnp.zeros((n_rows, 1), jnp.float32)
    key_work = key
    for _ in range(TOP_K):                            # small, static unroll
        row_key = jnp.max(key_work, axis=1, keepdims=True)   # (tm,1) single reduce
        onehot = key_work == row_key                          # exactly one col/row
        val = pltpu.bitcast(_from_sortable(row_key & hi_mask), jnp.float32)
        # Guard: if fewer than TOP_K valid columns exist the "winner" is a
        # masked / knocked-out column -> contribute zero weight.
        val = jnp.where(val > NEG_BIG * 0.5, val, 0.0)
        wmat = wmat + val * onehot.astype(jnp.float32)
        wsum = wsum + val
        key_work = jnp.where(onehot, _INT32_MIN, key_work)

    # ---- weighted top-3 gather as ONE matmul --------------------------------
    acc = jnp.dot(wmat, exist, preferred_element_type=jnp.float32)   # (tm, D_pad)
    # Exact per-row reciprocal: wsum is a signed sum that can be near zero, so
    # the approximate EUP reciprocal is avoided here (review concern).
    agg = acc * (1.0 / wsum)

    # ---- collapsed Linear layers (W_comb / b_comb precomputed in wrapper) ---
    out = jnp.dot(agg, w_ref[...], preferred_element_type=jnp.float32) + b_ref[...]
    out_ref[...] = out.astype(out_ref.dtype)


def make_embedding_transformer(existing_node_features, w_fc, b_fc, w_orth, b_orth):
    """One-time preparation (hoisted out of the per-call hot path): collapse the
    two bias-only Linear layers, pad everything lane-dense, and precompute the
    reciprocal norms of the existing nodes.  Returns a jitted forward fn."""
    f32 = jnp.float32
    n_ex, in_dim = existing_node_features.shape
    hidden_dim = w_fc.shape[1]

    # Collapse fc -> orthogonal_mapping (exact algebra, f32 rounding only):
    #   (x @ Wf + bf) @ Wo + bo  ==  x @ (Wf @ Wo) + (bf @ Wo + bo)
    w_comb = jnp.dot(w_fc.astype(f32), w_orth.astype(f32))
    b_comb = jnp.dot(b_fc.astype(f32), w_orth.astype(f32)) + b_orth.astype(f32)

    # Lane-dense padding: feature / hidden / existing-node axes -> multiples of 128.
    d_pad = _round_up(in_dim, LANE)
    h_pad = _round_up(hidden_dim, LANE)
    n_ex_pad = _round_up(n_ex, LANE)           # lane axis of sim / wmat / one-hot
    idx_bits = max(1, (n_ex_pad - 1).bit_length())

    exist_p = jnp.pad(existing_node_features.astype(f32),
                      ((0, n_ex_pad - n_ex), (0, d_pad - in_dim)))
    w_p = jnp.pad(w_comb, ((0, d_pad - in_dim), (0, h_pad - hidden_dim)))
    b_p = jnp.pad(b_comb, (0, h_pad - hidden_dim)).reshape(1, h_pad)

    # Reciprocal L2 norms of existing nodes (zero for padded columns).
    exn = jnp.sqrt(jnp.sum(exist_p * exist_p, axis=1))
    valid = jnp.arange(n_ex_pad) < n_ex
    rexn = jnp.where(valid, 1.0 / jnp.maximum(exn, 1e-20), 0.0).reshape(1, n_ex_pad)

    tile_cap = _row_tile_cap()

    @jax.jit
    def forward(new_node_features):
        n_new = new_node_features.shape[0]
        tm = min(_round_up(n_new, SUBLANE), tile_cap)   # new-node row tile
        n_new_pad = _round_up(n_new, tm)
        new_p = jnp.pad(new_node_features.astype(f32),
                        ((0, n_new_pad - n_new), (0, d_pad - in_dim)))

        # VMEM budget: grid-invariant blocks single-buffered, row tiles / output
        # double-buffered by the pipeline.  Explicit limit avoids the tight
        # scoped defaults on v5e (16 MiB) and v7x (32 MiB of 64 MiB physical).
        const_bytes = 4 * (exist_p.size + rexn.size + w_p.size + b_p.size)
        tile_bytes = 4 * 2 * (tm * d_pad + tm * h_pad)
        vmem_limit = int(min(max(2 * (const_bytes + tile_bytes), 32 * 1024 * 1024),
                             64 * 1024 * 1024))

        kernel = functools.partial(embedding_transformer_kernel,
                                   n_ex_valid=n_ex, n_ex_total=n_ex_pad,
                                   idx_bits=idx_bits)

        def const_spec(shape):   # grid-invariant block: single-buffer it
            return pl.BlockSpec(shape, lambda i: (0, 0),
                                pipeline_mode=pl.Buffered(1))

        out = pl.pallas_call(
            kernel,
            out_shape=jax.ShapeDtypeStruct((n_new_pad, h_pad), f32),
            grid=(n_new_pad // tm,),
            in_specs=[
                pl.BlockSpec((tm, d_pad), lambda i: (i, 0)),   # new-node row tile
                const_spec((n_ex_pad, d_pad)),                 # existing nodes
                const_spec((1, n_ex_pad)),                     # 1/||exist|| row
                const_spec((d_pad, h_pad)),                    # collapsed weight
                const_spec((1, h_pad)),                        # collapsed bias
            ],
            out_specs=pl.BlockSpec((tm, h_pad), lambda i: (i, 0)),
            compiler_params=pltpu.CompilerParams(
                dimension_semantics=("parallel",),
                vmem_limit_bytes=vmem_limit),
        )(new_p, exist_p, rexn, w_p, b_p)
        # TODO(synk): for very large n_ex, stream existing-node column tiles over
        # an "arbitrary" grid axis with an online running top-3 merge (removes the
        # full-resident exist VMEM ceiling and the full-width gather matmul cost).
        return out[:n_new, :hidden_dim]

    return forward


def reference_forward(new, exist, w_fc, b_fc, w_orth, b_orth):
    """Pure-JAX reference mirroring the PyTorch module (for sanity checking)."""
    new_norm = jnp.linalg.norm(new, axis=1, keepdims=True)
    exist_norm = jnp.linalg.norm(exist, axis=1, keepdims=True)
    sim = (new @ exist.T) / (new_norm * exist_norm.T + 1e-8)
    vals, idx = jax.lax.top_k(sim, TOP_K)
    top_feats = exist[idx]                                  # (N_new, K, D)
    weighted = top_feats * vals[..., None]
    agg = weighted.sum(axis=1) / vals.sum(axis=1, keepdims=True)
    h = agg @ w_fc + b_fc
    return h @ w_orth + b_orth


if __name__ == "__main__":
    # Small shapes consistent with the module's forward signature.
    num_new, num_existing = 8, 16
    input_dim, hidden_dim = 32, 32

    key = jax.random.PRNGKey(0)
    k1, k2, k3, k4, k5, k6 = jax.random.split(key, 6)

    new_nodes = jax.random.normal(k1, (num_new, input_dim), jnp.float32)
    existing_nodes = jax.random.normal(k2, (num_existing, input_dim), jnp.float32)

    # Deterministic parameter init (PyTorch Linear-style uniform bounds).
    bound_fc = 1.0 / (input_dim ** 0.5)
    w_fc = jax.random.uniform(k3, (input_dim, hidden_dim), jnp.float32,
                              -bound_fc, bound_fc)
    b_fc = jax.random.uniform(k4, (hidden_dim,), jnp.float32, -bound_fc, bound_fc)
    bound_o = 1.0 / (hidden_dim ** 0.5)
    w_orth = jax.random.uniform(k5, (hidden_dim, hidden_dim), jnp.float32,
                                -bound_o, bound_o)
    b_orth = jax.random.uniform(k6, (hidden_dim,), jnp.float32, -bound_o, bound_o)

    # Prepare once (hoisted padding / collapse / norms), then run the kernel.
    apply_fn = make_embedding_transformer(existing_nodes, w_fc, b_fc,
                                          w_orth, b_orth)
    out = apply_fn(new_nodes)
    out = jax.block_until_ready(out)

    ref = reference_forward(new_nodes, existing_nodes, w_fc, b_fc, w_orth, b_orth)
    assert out.shape == (num_new, hidden_dim)
    # Tolerance covers: collapsed-linear re-association, dropped 1e-8 epsilon in
    # the cosine denominator, and the <=~8e-6 relative quantization of the top-3
    # weights from the index-packed argmax keys.
    assert jnp.allclose(out, ref, atol=2e-3, rtol=2e-3), "mismatch vs reference"

    print("KERNEL_OK")
</pallas_src>

<mosaic_0001>
module attributes {stable_mosaic.version = 11 : i64} {
  func.func @embedding_transformer_kernel(%arg0: i32, %arg1: memref<8x128xf32, #tpu.memory_space<vmem>>, %arg2: memref<128x128xf32, #tpu.memory_space<vmem>>, %arg3: memref<1x128xf32, #tpu.memory_space<vmem>>, %arg4: memref<128x128xf32, #tpu.memory_space<vmem>>, %arg5: memref<1x128xf32, #tpu.memory_space<vmem>>, %arg6: memref<8x128xf32, #tpu.memory_space<vmem>>) attributes {dimension_semantics = [#tpu.dimension_semantics<parallel>], iteration_bounds = array<i64: 1>, scalar_prefetch = 0 : i64, scratch_operands = 0 : i64, tpu.core_type = #tpu.core_type<tc>, window_params = [{transform_indices = @transform_0, window_bounds = array<i64: 8, 128>}, {pipeline_mode = #tpu.pipeline_mode<synchronous>, transform_indices = @transform_1, window_bounds = array<i64: 128, 128>}, {pipeline_mode = #tpu.pipeline_mode<synchronous>, transform_indices = @transform_2, window_bounds = array<i64: 1, 128>}, {pipeline_mode = #tpu.pipeline_mode<synchronous>, transform_indices = @transform_3, window_bounds = array<i64: 128, 128>}, {pipeline_mode = #tpu.pipeline_mode<synchronous>, transform_indices = @transform_4, window_bounds = array<i64: 1, 128>}, {transform_indices = @transform_5, window_bounds = array<i64: 8, 128>}]} {
    %c0 = arith.constant 0 : index
    %c0_0 = arith.constant 0 : index
    %0 = vector.load %arg1[%c0, %c0_0] : memref<8x128xf32, #tpu.memory_space<vmem>>, vector<8x128xf32>
    %c0_1 = arith.constant 0 : index
    %c0_2 = arith.constant 0 : index
    %1 = vector.load %arg2[%c0_1, %c0_2] : memref<128x128xf32, #tpu.memory_space<vmem>>, vector<128x128xf32>
    %cst = arith.constant dense<0.000000e+00> : vector<8x128xf32>
    %2 = tpu.matmul %0, %1, %cst {dimension_numbers = #tpu.dot_dimension_numbers<[1], [1], [0], [0], [0, 0, 1, 0], [], []>} : vector<8x128xf32>, vector<128x128xf32>, vector<8x128xf32> -> vector<8x128xf32>
    %3 = arith.mulf %0, %0 : vector<8x128xf32>
    %cst_3 = arith.constant dense<0.000000e+00> : vector<8xf32>
    %4 = vector.multi_reduction <add>, %3, %cst_3 [1] : vector<8x128xf32> to vector<8xf32>
    %5 = vector.shape_cast %4 : vector<8xf32> to vector<8x1xf32>
    %cst_4 = arith.constant 1.000000e-30 : f32
    %6 = vector.broadcast %cst_4 : f32 to vector<8x1xf32>
    %7 = arith.maximumf %5, %6 : vector<8x1xf32>
    %8 = math.rsqrt %7 : vector<8x1xf32>
    %c0_5 = arith.constant 0 : index
    %c0_6 = arith.constant 0 : index
    %9 = vector.load %arg3[%c0_5, %c0_6] : memref<1x128xf32, #tpu.memory_space<vmem>>, vector<1x128xf32>
    %10 = vector.broadcast %9 : vector<1x128xf32> to vector<8x128xf32>
    %11 = arith.mulf %2, %10 : vector<8x128xf32>
    %12 = vector.broadcast %8 : vector<8x1xf32> to vector<8x128xf32>
    %13 = arith.mulf %11, %12 : vector<8x128xf32>
    %14 = tpu.iota {dimensions = array<i32: 1>} : vector<8x128xi32>
    %c16_i32 = arith.constant 16 : i32
    %15 = vector.broadcast %c16_i32 : i32 to vector<8x128xi32>
    %16 = arith.cmpi slt, %14, %15 : vector<8x128xi32>
    %cst_7 = arith.constant -1.000000e+30 : f32
    %17 = vector.broadcast %cst_7 : f32 to vector<8x128xf32>
    %18 = arith.select %16, %13, %17 : vector<8x128xi1>, vector<8x128xf32>
    %19 = tpu.bitcast %18 : vector<8x128xf32> -> vector<8x128xi32>
    %c0_i32 = arith.constant 0 : i32
    %20 = vector.broadcast %c0_i32 : i32 to vector<8x128xi32>
    %21 = arith.cmpi sge, %19, %20 : vector<8x128xi32>
    %c2147483647_i32 = arith.constant 2147483647 : i32
    %22 = vector.broadcast %c2147483647_i32 : i32 to vector<8x128xi32>
    %23 = arith.xori %19, %22 : vector<8x128xi32>
    %24 = arith.select %21, %19, %23 : vector<8x128xi1>, vector<8x128xi32>
    %c-128_i32 = arith.constant -128 : i32
    %25 = vector.broadcast %c-128_i32 : i32 to vector<8x128xi32>
    %26 = arith.andi %24, %25 : vector<8x128xi32>
    %c127_i32 = arith.constant 127 : i32
    %27 = vector.broadcast %c127_i32 : i32 to vector<8x128xi32>
    %28 = arith.subi %27, %14 : vector<8x128xi32>
    %29 = arith.ori %26, %28 : vector<8x128xi32>
    %cst_8 = arith.constant 0.000000e+00 : f32
    %30 = vector.broadcast %cst_8 : f32 to vector<8x128xf32>
    %cst_9 = arith.constant 0.000000e+00 : f32
    %31 = vector.broadcast %cst_9 : f32 to vector<8x1xf32>
    %cst_10 = arith.constant dense<-2147483648> : vector<8xi32>
    %32 = vector.multi_reduction <maxsi>, %29, %cst_10 [1] : vector<8x128xi32> to vector<8xi32>
    %33 = vector.shape_cast %32 : vector<8xi32> to vector<8x1xi32>
    %34 = vector.broadcast %33 : vector<8x1xi32> to vector<8x128xi32>
    %35 = arith.cmpi eq, %29, %34 : vector<8x128xi32>
    %c-128_i32_11 = arith.constant -128 : i32
    %36 = vector.broadcast %c-128_i32_11 : i32 to vector<8x1xi32>
    %37 = arith.andi %33, %36 : vector<8x1xi32>
    %c0_i32_12 = arith.constant 0 : i32
    %38 = vector.broadcast %c0_i32_12 : i32 to vector<8x1xi32>
    %39 = arith.cmpi sge, %37, %38 : vector<8x1xi32>
    %c2147483647_i32_13 = arith.constant 2147483647 : i32
    %40 = vector.broadcast %c2147483647_i32_13 : i32 to vector<8x1xi32>
    %41 = arith.xori %37, %40 : vector<8x1xi32>
    %42 = arith.select %39, %37, %41 : vector<8x1xi1>, vector<8x1xi32>
    %43 = tpu.bitcast %42 : vector<8x1xi32> -> vector<8x1xf32>
    %cst_14 = arith.constant -5.000000e+29 : f32
    %44 = vector.broadcast %cst_14 : f32 to vector<8x1xf32>
    %45 = arith.cmpf ogt, %43, %44 : vector<8x1xf32>
    %cst_15 = arith.constant 0.000000e+00 : f32
    %46 = vector.broadcast %cst_15 : f32 to vector<8x1xf32>
    %47 = arith.select %45, %43, %46 : vector<8x1xi1>, vector<8x1xf32>
    %48 = arith.extui %35 : vector<8x128xi1> to vector<8x128xi32>
    %49 = arith.sitofp %48 : vector<8x128xi32> to vector<8x128xf32>
    %50 = vector.broadcast %47 : vector<8x1xf32> to vector<8x128xf32>
    %51 = arith.mulf %50, %49 : vector<8x128xf32>
    %52 = arith.addf %30, %51 : vector<8x128xf32>
    %53 = arith.addf %31, %47 : vector<8x1xf32>
    %c-2147483648_i32 = arith.constant -2147483648 : i32
    %54 = vector.broadcast %c-2147483648_i32 : i32 to vector<8x128xi32>
    %55 = arith.select %35, %54, %29 : vector<8x128xi1>, vector<8x128xi32>
    %cst_16 = arith.constant dense<-2147483648> : vector<8xi32>
    %56 = vector.multi_reduction <maxsi>, %55, %cst_16 [1] : vector<8x128xi32> to vector<8xi32>
    %57 = vector.shape_cast %56 : vector<8xi32> to vector<8x1xi32>
    %58 = vector.broadcast %57 : vector<8x1xi32> to vector<8x128xi32>
    %59 = arith.cmpi eq, %55, %58 : vector<8x128xi32>
    %c-128_i32_17 = arith.constant -128 : i32
    %60 = vector.broadcast %c-128_i32_17 : i32 to vector<8x1xi32>
    %61 = arith.andi %57, %60 : vector<8x1xi32>
    %c0_i32_18 = arith.constant 0 : i32
    %62 = vector.broadcast %c0_i32_18 : i32 to vector<8x1xi32>
    %63 = arith.cmpi sge, %61, %62 : vector<8x1xi32>
    %c2147483647_i32_19 = arith.constant 2147483647 : i32
    %64 = vector.broadcast %c2147483647_i32_19 : i32 to vector<8x1xi32>
    %65 = arith.xori %61, %64 : vector<8x1xi32>
    %66 = arith.select %63, %61, %65 : vector<8x1xi1>, vector<8x1xi32>
    %67 = tpu.bitcast %66 : vector<8x1xi32> -> vector<8x1xf32>
    %cst_20 = arith.constant -5.000000e+29 : f32
    %68 = vector.broadcast %cst_20 : f32 to vector<8x1xf32>
    %69 = arith.cmpf ogt, %67, %68 : vector<8x1xf32>
    %cst_21 = arith.constant 0.000000e+00 : f32
    %70 = vector.broadcast %cst_21 : f32 to vector<8x1xf32>
    %71 = arith.select %69, %67, %70 : vector<8x1xi1>, vector<8x1xf32>
    %72 = arith.extui %59 : vector<8x128xi1> to vector<8x128xi32>
    %73 = arith.sitofp %72 : vector<8x128xi32> to vector<8x128xf32>
    %74 = vector.broadcast %71 : vector<8x1xf32> to vector<8x128xf32>
    %75 = arith.mulf %74, %73 : vector<8x128xf32>
    %76 = arith.addf %52, %75 : vector<8x128xf32>
    %77 = arith.addf %53, %71 : vector<8x1xf32>
    %c-2147483648_i32_22 = arith.constant -2147483648 : i32
    %78 = vector.broadcast %c-2147483648_i32_22 : i32 to vector<8x128xi32>
    %79 = arith.select %59, %78, %55 : vector<8x128xi1>, vector<8x128xi32>
    %cst_23 = arith.constant dense<-2147483648> : vector<8xi32>
    %80 = vector.multi_reduction <maxsi>, %79, %cst_23 [1] : vector<8x128xi32> to vector<8xi32>
    %81 = vector.shape_cast %80 : vector<8xi32> to vector<8x1xi32>
    %82 = vector.broadcast %81 : vector<8x1xi32> to vector<8x128xi32>
    %83 = arith.cmpi eq, %79, %82 : vector<8x128xi32>
    %c-128_i32_24 = arith.constant -128 : i32
    %84 = vector.broadcast %c-128_i32_24 : i32 to vector<8x1xi32>
    %85 = arith.andi %81, %84 : vector<8x1xi32>
    %c0_i32_25 = arith.constant 0 : i32
    %86 = vector.broadcast %c0_i32_25 : i32 to vector<8x1xi32>
    %87 = arith.cmpi sge, %85, %86 : vector<8x1xi32>
    %c2147483647_i32_26 = arith.constant 2147483647 : i32
    %88 = vector.broadcast %c2147483647_i32_26 : i32 to vector<8x1xi32>
    %89 = arith.xori %85, %88 : vector<8x1xi32>
    %90 = arith.select %87, %85, %89 : vector<8x1xi1>, vector<8x1xi32>
    %91 = tpu.bitcast %90 : vector<8x1xi32> -> vector<8x1xf32>
    %cst_27 = arith.constant -5.000000e+29 : f32
    %92 = vector.broadcast %cst_27 : f32 to vector<8x1xf32>
    %93 = arith.cmpf ogt, %91, %92 : vector<8x1xf32>
    %cst_28 = arith.constant 0.000000e+00 : f32
    %94 = vector.broadcast %cst_28 : f32 to vector<8x1xf32>
    %95 = arith.select %93, %91, %94 : vector<8x1xi1>, vector<8x1xf32>
    %96 = arith.extui %83 : vector<8x128xi1> to vector<8x128xi32>
    %97 = arith.sitofp %96 : vector<8x128xi32> to vector<8x128xf32>
    %98 = vector.broadcast %95 : vector<8x1xf32> to vector<8x128xf32>
    %99 = arith.mulf %98, %97 : vector<8x128xf32>
    %100 = arith.addf %76, %99 : vector<8x128xf32>
    %101 = arith.addf %77, %95 : vector<8x1xf32>
    %cst_29 = arith.constant dense<0.000000e+00> : vector<8x128xf32>
    %102 = tpu.matmul %100, %1, %cst_29 {dimension_numbers = #tpu.dot_dimension_numbers<[1], [0], [0], [1], [0, 0, 1, 1], [], []>} : vector<8x128xf32>, vector<128x128xf32>, vector<8x128xf32> -> vector<8x128xf32>
    %cst_30 = arith.constant 1.000000e+00 : f32
    %103 = vector.broadcast %cst_30 : f32 to vector<8x1xf32>
    %104 = arith.divf %103, %101 : vector<8x1xf32>
    %105 = vector.broadcast %104 : vector<8x1xf32> to vector<8x128xf32>
    %106 = arith.mulf %102, %105 : vector<8x128xf32>
    %c0_31 = arith.constant 0 : index
    %c0_32 = arith.constant 0 : index
    %107 = vector.load %arg4[%c0_31, %c0_32] : memref<128x128xf32, #tpu.memory_space<vmem>>, vector<128x128xf32>
    %cst_33 = arith.constant dense<0.000000e+00> : vector<8x128xf32>
    %108 = tpu.matmul %106, %107, %cst_33 {dimension_numbers = #tpu.dot_dimension_numbers<[1], [0], [0], [1], [0, 0, 1, 1], [], []>} : vector<8x128xf32>, vector<128x128xf32>, vector<8x128xf32> -> vector<8x128xf32>
    %c0_34 = arith.constant 0 : index
    %c0_35 = arith.constant 0 : index
    %109 = vector.load %arg5[%c0_34, %c0_35] : memref<1x128xf32, #tpu.memory_space<vmem>>, vector<1x128xf32>
    %110 = vector.broadcast %109 : vector<1x128xf32> to vector<8x128xf32>
    %111 = arith.addf %108, %110 : vector<8x128xf32>
    %c0_36 = arith.constant 0 : index
    %c0_37 = arith.constant 0 : index
    %112 = vector.load %arg6[%c0_36, %c0_37] : memref<8x128xf32, #tpu.memory_space<vmem>>, vector<8x128xf32>
    tpu.vector_store %arg6[%c0_36, %c0_37], %111 {strides = array<i32>} : memref<8x128xf32, #tpu.memory_space<vmem>>, vector<8x128xf32>,
    return
  }
  func.func @transform_0(%arg0: i32) -> (i32, i32) {
    %c0_i32 = arith.constant 0 : i32
    %c0_i32_0 = arith.constant 0 : i32
    return %arg0, %c0_i32 : i32, i32
  }
  func.func @transform_1(%arg0: i32) -> (i32, i32) {
    %c0_i32 = arith.constant 0 : i32
    %c0_i32_0 = arith.constant 0 : i32
    %c0_i32_1 = arith.constant 0 : i32
    return %c0_i32, %c0_i32_0 : i32, i32
  }
  func.func @transform_2(%arg0: i32) -> (i32, i32) {
    %c0_i32 = arith.constant 0 : i32
    %c0_i32_0 = arith.constant 0 : i32
    %c0_i32_1 = arith.constant 0 : i32
    return %c0_i32, %c0_i32_0 : i32, i32
  }
  func.func @transform_3(%arg0: i32) -> (i32, i32) {
    %c0_i32 = arith.constant 0 : i32
    %c0_i32_0 = arith.constant 0 : i32
    %c0_i32_1 = arith.constant 0 : i32
    return %c0_i32, %c0_i32_0 : i32, i32
  }
  func.func @transform_4(%arg0: i32) -> (i32, i32) {
    %c0_i32 = arith.constant 0 : i32
    %c0_i32_0 = arith.constant 0 : i32
    %c0_i32_1 = arith.constant 0 : i32
    return %c0_i32, %c0_i32_0 : i32, i32
  }
  func.func @transform_5(%arg0: i32) -> (i32, i32) {
    %c0_i32 = arith.constant 0 : i32
    %c0_i32_0 = arith.constant 0 : i32
    return %arg0, %c0_i32 : i32, i32
  }
}

</mosaic_0001>

<bundles_post_ra>
// kernel: forward.1
= control target key start
LH: loop header
LB: loop body
LE: loop exit
PB: predicated region body
PF: predicated region fallthrough
CT: control target
= control target key end

     0   :  { %10 = vsyncpa [#allocation3], 0  ;;  %s862_s0 = inlined_call_operand.vmem [shape: f32[8,128], index: 0, kind: input, shape index: {}]   ;;  %s863_s1 = inlined_call_operand.hbm [shape: f32[128,128], index: 1, kind: input, shape index: {}]   ;;  %s864_s2 = inlined_call_operand.vmem [shape: f32[1,128], index: 2, kind: input, shape index: {}]   ;;  %s865_s3 = inlined_call_operand.hbm [shape: f32[128,128], index: 3, kind: input, shape index: {}]   ;;  %s866_s4 = inlined_call_operand.vmem [shape: f32[1,128], index: 4, kind: input, shape index: {}]   ;;  %s867_s5 = inlined_call_operand.hbm [shape: f32[8,128], index: 5, kind: output, shape index: {}]  }
   0x1   :  { %11 = vsyncpa [#allocation6], 0 }
   0x2   :  { %12 = vsyncpa [#allocation4], 0  ;;  %s744_s18 = smov [#allocation2]   ;;  %s672_s22 = scalar_lea.hbm %s863_s1, 2048 }
   0x3   :  { %s20_s19 = sshll.u32 %s744_s18, 4  ;;  %p673_p0 = scmp.ne.s32.totalorder %s863_s1, %s672_s22  ;;  %s21_s19 = int_to_ptr.vmem [resolvable:$true] %s20_s19 }
   0x4   :  { %p676_p1 = scmp.lt.u32.totalorder %s672_s22, %s863_s1 }
   0x6   :  { %p678_p2 = pnand %p676_p1, %p673_p0 }
   0x8   :  { %681 = shalt.err (!%p678_p2)
}
   0x9   :  { %s682_s27 = scalar_lea.vmem %s21_s19, 2048  ;;  %p687_p4 = scmp.lt.s32.totalorder %s21_s19, %s21_s19 }
   0xa   :  { %p683_p3 = scmp.ne.s32.totalorder %s21_s19, %s682_s27  ;;  %p688_p5 = scmp.lt.s32.totalorder %s682_s27, %s682_s27 }
   0xc   :  { %p689_p6 = por %p688_p5, %p687_p4 }
   0xe   :  { %p690_p7 = pnand %p689_p6, %p683_p3 }
  0x10   :  { %693 = shalt.err (!%p690_p7)
}
  0x11   :  { %s745_s28 = smov 128   ;;  %s746_s29 = smov 8  }
  0x12   :  { %26 = dma.hbm_to_vmem [thread:$0]  %s863_s1, 2048, %s21_s19, [#allocation3], %s745_s28, %s745_s28, %s746_s29  }
  0x13   :  { %s747_s7 = smov [#allocation5]   ;;  %s694_s11 = scalar_lea.hbm %s865_s3, 2048 }
  0x14   :  { %s34_s8 = sshll.u32 %s747_s7, 4  ;;  %p695_p8 = scmp.ne.s32.totalorder %s865_s3, %s694_s11  ;;  %s35_s8 = int_to_ptr.vmem [resolvable:$true] %s34_s8 }
  0x15   :  { %p698_p9 = scmp.lt.u32.totalorder %s694_s11, %s865_s3 }
  0x17   :  { %p700_p10 = pnand %p698_p9, %p695_p8 }
  0x19   :  { %703 = shalt.err (!%p700_p10)
}
  0x1a   :  { %s704_s16 = scalar_lea.vmem %s35_s8, 2048  ;;  %p709_p12 = scmp.lt.s32.totalorder %s35_s8, %s35_s8 }
  0x1b   :  { %p705_p11 = scmp.ne.s32.totalorder %s35_s8, %s704_s16  ;;  %p710_p13 = scmp.lt.s32.totalorder %s704_s16, %s704_s16 }
  0x1d   :  { %p711_p0 = por %p710_p13, %p709_p12 }
  0x1f   :  { %p712_p1 = pnand %p711_p0, %p705_p11 }
  0x21   :  { %715 = shalt.err (!%p712_p1)
}
  0x22   :  { %40 = dma.hbm_to_vmem [thread:$0]  %s865_s3, 2048, %s35_s8, [#allocation6], %s745_s28, %s745_s28, %s746_s29  }
  0x23   :  { %738 = dma.done.wait [#allocation3], 2048  }
  0x24   :  { %739 = vsyncadd [#allocation3], 4294965248 }
  0x25   :  { %740 = dma.done.wait [#allocation6], 2048  }
  0x26   :  { %741 = vsyncadd [#allocation6], 4294965248  ;;  %v748_v0 = vmov 0.0|0.0   ;;  %vm749_vm0 = vmmov 0   ;;  %v750_v1 = vmov 0.0   ;;  %v50_v2 = vld [vmem:[#allocation2] sm:$0xff]  ;;  %v150_v30 = vlaneseq }
  0x27   :  { %588 = vmatprep.subr.bf16.mxu0 %v748_v0  ;;  %515 = vmatprep.mubr.msk.f32.mxu0 %vm749_vm0, %v750_v1  ;;  %v51_v3 = vld [vmem:[#allocation2 + $0x8] sm:$0xff]  ;;  %v52_v5 = vld [vmem:[#allocation2 + $0x10] sm:$0xff]  ;;  %v53_v6 = vld [vmem:[#allocation2 + $0x18] sm:$0xff]  ;;  %s751_s21 = smov [#allocation7]  }
  0x28   :  { %612 = vmatprep.subr.bf16.mxu1 %v748_v0  ;;  %550 = vmatprep.mubr.msk.f32.mxu1 %vm749_vm0, %v750_v1  ;;  %v589_v4 = vpack.c.bf16 %v51_v3, %v50_v2  ;;  %v592_v7 = vpack.c.bf16 %v53_v6, %v52_v5  ;;  %v49_v8 = vld [vmem:[%s862_s0] sm:$0xff]  ;;  %v54_v9 = vld [vmem:[#allocation2 + $0x20] sm:$0xff]  ;;  %v55_v10 = vld [vmem:[#allocation2 + $0x28] sm:$0xff]  ;;  %v151_v32 = vand.u32 127, %v150_v30  ;;  %s417_s22 = sshll.u32 %s751_s21, 4  ;;  %s418_s22 = int_to_ptr.vmem [resolvable:$true] %s417_s22 }
  0x29   :  { %v136_v11 = vmul.f32 %v49_v8, %v49_v8  ;;  %v595_v12 = vpack.c.bf16 %v55_v10, %v54_v9  ;;  %v56_v13 = vld [vmem:[#allocation2 + $0x30] sm:$0xff]  ;;  %v57_v14 = vld [vmem:[#allocation2 + $0x38] sm:$0xff]  ;;  %v58_v16 = vld [vmem:[#allocation2 + $0x40] sm:$0xff]  ;;  %s716_s23 = scalar_lea.vmem %s418_s22, 128  ;;  %p721_p3 = scmp.lt.s32.totalorder %s418_s22, %s418_s22 }
  0x2a   :  { %590 = vmatpush3.bf16.xpose.msra.mxu0 %v589_v4  ;;  %614 = vmatpush3.bf16.msra.mxu1 %v589_v4  ;;  %v598_v15 = vpack.c.bf16 %v57_v14, %v56_v13  ;;  %v59_v17 = vld [vmem:[#allocation2 + $0x48] sm:$0xff]  ;;  %v60_v19 = vld [vmem:[#allocation2 + $0x50] sm:$0xff]  ;;  %v61_v20 = vld [vmem:[#allocation2 + $0x58] sm:$0xff]  ;;  %vm152_vm1 = vcmp.lt.s32.totalorder %v151_v32, 16  ;;  %v159_v40 = vsub.s32 127, %v151_v32  ;;  %p717_p2 = scmp.ne.s32.totalorder %s418_s22, %s716_s23  ;;  %p722_p4 = scmp.lt.s32.totalorder %s716_s23, %s716_s23 }
  0x2b   :  { %591 = vmatprep.subr.bf16.mxu0 %v748_v0  ;;  %615 = vmatprep.subr.bf16.mxu1 %v748_v0  ;;  %v601_v18 = vpack.c.bf16 %v59_v17, %v58_v16  ;;  %v604_v21 = vpack.c.bf16 %v61_v20, %v60_v19  ;;  %v62_v22 = vld [vmem:[#allocation2 + $0x60] sm:$0xff]  ;;  %v63_v23 = vld [vmem:[#allocation2 + $0x68] sm:$0xff]  ;;  %v64_v25 = vld [vmem:[#allocation2 + $0x70] sm:$0xff] }
  0x2c   :  { %137 = vadd.xlane.f32.xlu0 %v136_v11  ;;  %v607_v24 = vpack.c.bf16 %v63_v23, %v62_v22  ;;  %v65_v26 = vld [vmem:[#allocation2 + $0x78] sm:$0xff]  ;;  %p723_p5 = por %p722_p4, %p721_p3 }
  0x2d   :  { %v610_v27 = vpack.c.bf16 %v65_v26, %v64_v25  ;;  %v427_v31 = vld [vmem:[%s864_s2] ss:$0 sm:$0xff] }
  0x2e   :  { %617 = vmatpush3.bf16.msra.mxu1 %v592_v7  ;;  %p724_p6 = pnand %p723_p5, %p717_p2 }
  0x2f   :  { %618 = vmatprep.subr.bf16.mxu1 %v748_v0 }
  0x32   :  { %593 = vmatpush3.bf16.xpose.msra.mxu0 %v592_v7  ;;  %620 = vmatpush3.bf16.msra.mxu1 %v595_v12 }
  0x33   :  { %594 = vmatprep.subr.bf16.mxu0 %v748_v0  ;;  %621 = vmatprep.subr.bf16.mxu1 %v748_v0 }
  0x36   :  { %623 = vmatpush3.bf16.msra.mxu1 %v598_v15 }
  0x37   :  { %624 = vmatprep.subr.bf16.mxu1 %v748_v0 }
  0x3a   :  { %596 = vmatpush3.bf16.xpose.msra.mxu0 %v595_v12  ;;  %626 = vmatpush3.bf16.msra.mxu1 %v601_v18 }
  0x3b   :  { %597 = vmatprep.subr.bf16.mxu0 %v748_v0  ;;  %627 = vmatprep.subr.bf16.mxu1 %v748_v0 }
  0x3e   :  { %629 = vmatpush3.bf16.msra.mxu1 %v604_v21 }
  0x3f   :  { %630 = vmatprep.subr.bf16.mxu1 %v748_v0 }
  0x42   :  { %599 = vmatpush3.bf16.xpose.msra.mxu0 %v598_v15  ;;  %632 = vmatpush3.bf16.msra.mxu1 %v607_v24 }
  0x43   :  { %600 = vmatprep.subr.bf16.mxu0 %v748_v0  ;;  %633 = vmatprep.subr.bf16.mxu1 %v748_v0 }
  0x46   :  { %635 = vmatpush3.bf16.msra.mxu1 %v610_v27 }
  0x47   :  { %636 = vmatprep.subr.bf16.mxu1 %v748_v0 }
  0x4a   :  { %602 = vmatpush3.bf16.xpose.msra.mxu0 %v601_v18 }
  0x4b   :  { %603 = vmatprep.subr.bf16.mxu0 %v748_v0 }
  0x52   :  { %605 = vmatpush3.bf16.xpose.msra.mxu0 %v604_v21 }
  0x53   :  { %606 = vmatprep.subr.bf16.mxu0 %v748_v0 }
  0x5a   :  { %608 = vmatpush3.bf16.xpose.msra.mxu0 %v607_v24 }
  0x5b   :  { %609 = vmatprep.subr.bf16.mxu0 %v748_v0 }
  0x62   :  { %611 = vmatpush3.bf16.xpose.msra.mxu0 %v610_v27 }
  0x69   :  { %516 = vmatmul.mubr.f32.vlgmr.msra.gmra.mrb[0].mxu0 %v49_v8 }
  0xb9   :  { %v138_v28 = vpop.xlane.xlu0 %137 }
  0xba   :  { %v139_v29 = vmax.f32 %v138_v28, 1e-30 }
  0xbc   :  { %668 = vrsqrt.f32 %v139_v29 }
  0xc6   :  { %v669_v33 = vpop.eup %668 }
 0x13c   :  { %v132_v34 = vpop.f32.mrb[0].mxu0 }
 0x13d   :  { %v148_v35 = vmul.f32 %v427_v31, %v132_v34  ;;  %v517_v36 = vpop.f32.mrb[1].mxu0  ;;  %v317_v34 = vld [vmem:[#allocation5] sm:$0xff] }
 0x13f   :  { %v149_v37 = vmul.f32 %v669_v33, %v148_v35  ;;  %v318_v35 = vld [vmem:[#allocation5 + $0x8] sm:$0xff] }
 0x141   :  { %v153_v38 = vsel %vm152_vm1, %v149_v37, -1e+30 }
 0x142   :  { %vm155_vm2 = vcmp.ge.s32.totalorder %v153_v38, 0  ;;  %v156_v39 = vxor.u32 2147483647, %v153_v38 }
 0x144   :  { %v157_v41 = vsel %vm155_vm2, %v153_v38, %v156_v39 }
 0x145   :  { %v158_v42 = vand.u32 4294967168, %v157_v41 }
 0x147   :  { %v160_v43 = vor.u32 %v159_v40, %v158_v42  ;;  %v637_v40 = vpack.c.bf16 %v318_v35, %v317_v34  ;;  %v319_v42 = vld [vmem:[#allocation5 + $0x10] sm:$0xff] }
 0x149   :  { %v162_v44 = vshra.s32 %v160_v43, 16  ;;  %v161_v46 = vand.u32 65535, %v160_v43 }
 0x14b   :  { %v164_v45 = vcvt.s32.f32 %v162_v44  ;;  %v163_v48 = vcvt.s32.f32 %v161_v46  ;;  %v322_v46 = vld [vmem:[#allocation5 + $0x28] sm:$0xff] }
 0x14d   :  { %165 = vmax.xlane.f32.xlu0 %v164_v45 }
 0x1da   :  { %v166_v47 = vpop.xlane.xlu0 %165 }
 0x1db   :  { %vm167_vm3 = vcmp.eq.f32.partialorder %v164_v45, %v166_v47  ;;  %v172_v50 = vcvt.f32.s32 %v166_v47  ;;  %v321_v45 = vld [vmem:[#allocation5 + $0x20] sm:$0xff] }
 0x1dc   :  { %v168_v49 = vsel %vm167_vm3, %v163_v48, -inf  ;;  %v643_v47 = vpack.c.bf16 %v322_v46, %v321_v45  ;;  %v323_v48 = vld [vmem:[#allocation5 + $0x30] sm:$0xff] }
 0x1dd   :  { %169 = vmax.xlane.f32.xlu1 %v168_v49  ;;  %v173_v52 = vshll.u32 %v172_v50, 16  ;;  %v324_v49 = vld [vmem:[#allocation5 + $0x38] sm:$0xff] }
 0x1de   :  { %v646_v50 = vpack.c.bf16 %v324_v49, %v323_v48 }
 0x26a   :  { %v170_v51 = vpop.xlane.xlu1 %169 }
 0x26b   :  { %v171_v53 = vcvt.f32.s32 %v170_v51  ;;  %v325_v51 = vld [vmem:[#allocation5 + $0x40] sm:$0xff] }
 0x26d   :  { %v174_v54 = vadd.s32 %v173_v52, %v171_v53  ;;  %v326_v52 = vld [vmem:[#allocation5 + $0x48] sm:$0xff] }
 0x26e   :  { %v649_v53 = vpack.c.bf16 %v326_v52, %v325_v51 }
 0x26f   :  { %vm175_vm4 = vcmp.eq.s32.totalorder %v160_v43, %v174_v54  ;;  %v176_v62 = vand.u32 4294967168, %v174_v54  ;;  %v328_v54 = vld [vmem:[#allocation5 + $0x58] sm:$0xff] }
 0x270   :  { %v188_v55 = vsel %vm175_vm4, 2147483648, %v160_v43  ;;  %v428_v15 = vsel %vm175_vm4, 1.0, %v750_v1  ;;  %v320_v43 = vld [vmem:[#allocation5 + $0x18] sm:$0xff] }
 0x271   :  { %v190_v56 = vshra.s32 %v188_v55, 16  ;;  %v189_v58 = vand.u32 65535, %v188_v55  ;;  %v178_v2 = vxor.u32 2147483647, %v176_v62  ;;  %vm177_vm6 = vcmp.ge.s32.totalorder %v176_v62, 0 }
 0x272   :  { %v640_v44 = vpack.c.bf16 %v320_v43, %v319_v42 }
 0x273   :  { %v192_v57 = vcvt.s32.f32 %v190_v56  ;;  %v191_v60 = vcvt.s32.f32 %v189_v58  ;;  %v179_v6 = vsel %vm177_vm6, %v176_v62, %v178_v2  ;;  %v329_v56 = vld [vmem:[#allocation5 + $0x60] sm:$0xff] }
 0x274   :  { %vm181_vm8 = vcmp.gt.f32.partialorder %v179_v6, -5e+29 }
 0x275   :  { %193 = vmax.xlane.f32.xlu1 %v192_v57  ;;  %v182_v12 = vsel %vm181_vm8, %v179_v6, 0.0 }
 0x276   :  { %v185_v18 = vmul.f32 %v428_v15, %v182_v12 }
 0x302   :  { %v194_v59 = vpop.xlane.xlu1 %193 }
 0x303   :  { %vm195_vm5 = vcmp.eq.f32.partialorder %v192_v57, %v194_v59  ;;  %v200_v63 = vcvt.f32.s32 %v194_v59  ;;  %v330_v57 = vld [vmem:[#allocation5 + $0x68] sm:$0xff]  ;;  %v331_v59 = vld [vmem:[#allocation5 + $0x70] sm:$0xff] }
 0x304   :  { %v196_v61 = vsel %vm195_vm5, %v191_v60, -inf  ;;  %v655_v58 = vpack.c.bf16 %v330_v57, %v329_v56  ;;  %v332_v60 = vld [vmem:[#allocation5 + $0x78] sm:$0xff] }
 0x305   :  { %197 = vmax.xlane.f32.xlu0 %v196_v61  ;;  %v201_v4 = vshll.u32 %v200_v63, 16  ;;  %v658_v61 = vpack.c.bf16 %v332_v60, %v331_v59 }
 0x392   :  { %v198_v3 = vpop.xlane.xlu0 %197 }
 0x393   :  { %v199_v5 = vcvt.f32.s32 %v198_v3 }
 0x395   :  { %v202_v7 = vadd.s32 %v201_v4, %v199_v5  ;;  %v431_v4 = vld [vmem:[%s866_s4] ss:$0 sm:$0xff] }
 0x397   :  { %vm203_vm7 = vcmp.eq.s32.totalorder %v188_v55, %v202_v7  ;;  %v204_v8 = vand.u32 4294967168, %v202_v7 }
 0x398   :  { %v216_v9 = vsel %vm203_vm7, 2147483648, %v188_v55  ;;  %v429_v17 = vsel %vm203_vm7, 1.0, %v750_v1 }
 0x399   :  { %vm205_vm9 = vcmp.ge.s32.totalorder %v204_v8, 0  ;;  %v206_v10 = vxor.u32 2147483647, %v204_v8  ;;  %v218_v11 = vshra.s32 %v216_v9, 16  ;;  %v217_v21 = vand.u32 65535, %v216_v9 }
 0x39b   :  { %v207_v13 = vsel %vm205_vm9, %v204_v8, %v206_v10  ;;  %v220_v14 = vcvt.s32.f32 %v218_v11  ;;  %v219_v23 = vcvt.s32.f32 %v217_v21 }
 0x39c   :  { %vm209_vm10 = vcmp.gt.f32.partialorder %v207_v13, -5e+29 }
 0x39d   :  { %v210_v16 = vsel %vm209_vm10, %v207_v13, 0.0  ;;  %221 = vmax.xlane.f32.xlu1 %v220_v14 }
 0x39e   :  { %v213_v19 = vmul.f32 %v429_v17, %v210_v16  ;;  %v215_v33 = vadd.f32 %v210_v16, %v182_v12 }
 0x3a0   :  { %v214_v20 = vadd.f32 %v213_v19, %v185_v18 }
 0x42a   :  { %v222_v22 = vpop.xlane.xlu1 %221 }
 0x42b   :  { %vm223_vm11 = vcmp.eq.f32.partialorder %v220_v14, %v222_v22  ;;  %v228_v25 = vcvt.f32.s32 %v222_v22 }
 0x42c   :  { %v224_v24 = vsel %vm223_vm11, %v219_v23, -inf }
 0x42d   :  { %225 = vmax.xlane.f32.xlu0 %v224_v24  ;;  %v229_v27 = vshll.u32 %v228_v25, 16 }
 0x4ba   :  { %v226_v26 = vpop.xlane.xlu0 %225 }
 0x4bb   :  { %v227_v28 = vcvt.f32.s32 %v226_v26 }
 0x4bd   :  { %v230_v29 = vadd.s32 %v229_v27, %v227_v28 }
 0x4bf   :  { %v232_v30 = vand.u32 4294967168, %v230_v29  ;;  %vm231_vm13 = vcmp.eq.s32.totalorder %v216_v9, %v230_v29 }
 0x4c0   :  { %v430_v37 = vsel %vm231_vm13, 1.0, %v750_v1 }
 0x4c1   :  { %vm233_vm12 = vcmp.ge.s32.totalorder %v232_v30, 0  ;;  %v234_v31 = vxor.u32 2147483647, %v232_v30 }
 0x4c3   :  { %v235_v32 = vsel %vm233_vm12, %v232_v30, %v234_v31 }
 0x4c4   :  { %vm237_vm14 = vcmp.gt.f32.partialorder %v235_v32, -5e+29 }
 0x4c5   :  { %v238_v36 = vsel %vm237_vm14, %v235_v32, 0.0 }
 0x4c6   :  { %v241_v38 = vmul.f32 %v430_v37, %v238_v36  ;;  %v243_v39 = vadd.f32 %v238_v36, %v215_v33 }
 0x4c8   :  { %v242_v41 = vadd.f32 %v241_v38, %v214_v20  ;;  %670 = vrcp.f32 %v243_v39 }
 0x4ca   :  { %551 = vmatmul.mubr.f32.vlgmr.msra.gmra.mrb[0].mxu1 %v242_v41 }
 0x4cb   :  { %638 = vmatpush3.bf16.msra.mxu1 %v637_v40  ;;  %585 = vmatprep.mubr.msk.f32.mxu1 %vm749_vm0, %v750_v1  ;;  %v327_v1 = vld [vmem:[#allocation5 + $0x50] sm:$0xff] }
 0x4cc   :  { %639 = vmatprep.subr.bf16.mxu1 %v748_v0  ;;  %v652_v55 = vpack.c.bf16 %v328_v54, %v327_v1 }
 0x4cf   :  { %641 = vmatpush3.bf16.msra.mxu1 %v640_v44 }
 0x4d0   :  { %642 = vmatprep.subr.bf16.mxu1 %v748_v0 }
 0x4d2   :  { %v671_v62 = vpop.eup %670 }
 0x4d3   :  { %644 = vmatpush3.bf16.msra.mxu1 %v643_v47 }
 0x4d4   :  { %645 = vmatprep.subr.bf16.mxu1 %v748_v0 }
 0x4d7   :  { %647 = vmatpush3.bf16.msra.mxu1 %v646_v50 }
 0x4d8   :  { %648 = vmatprep.subr.bf16.mxu1 %v748_v0 }
 0x4db   :  { %650 = vmatpush3.bf16.msra.mxu1 %v649_v53 }
 0x4dc   :  { %651 = vmatprep.subr.bf16.mxu1 %v748_v0 }
 0x4df   :  { %653 = vmatpush3.bf16.msra.mxu1 %v652_v55 }
 0x4e0   :  { %654 = vmatprep.subr.bf16.mxu1 %v748_v0 }
 0x4e3   :  { %656 = vmatpush3.bf16.msra.mxu1 %v655_v58 }
 0x4e4   :  { %657 = vmatprep.subr.bf16.mxu1 %v748_v0 }
 0x4e7   :  { %659 = vmatpush3.bf16.msra.mxu1 %v658_v61 }
 0x59d   :  { %v310_v63 = vpop.f32.mrb[0].mxu1 }
 0x59e   :  { %v316_v2 = vmul.f32 %v671_v62, %v310_v63  ;;  %v552_v3 = vpop.f32.mrb[1].mxu1 }
 0x5a0   :  { %586 = vmatmul.mubr.f32.vlgmr.msra.gmra.mrb[2].mxu1 %v316_v2 }
 0x673   :  { %v406_v5 = vpop.f32.mrb[2].mxu1 }
 0x674   :  { %v407_v6 = vadd.f32 %v431_v4, %v406_v5  ;;  %v587_v7 = vpop.f32.mrb[3].mxu1 }
 0x676   :  { %410 = vst [vmem:[#allocation7] sm:$0xff] %v407_v6 }
 0x677   :  { %727 = shalt.err (!%p724_p6)
}
 0x678   :  { %s728_s26 = scalar_lea.hbm %s867_s5, 128 }
 0x679   :  { %p729_p7 = scmp.ne.s32.totalorder %s867_s5, %s728_s26  ;;  %p732_p8 = scmp.lt.u32.totalorder %s728_s26, %s867_s5 }
 0x67b   :  { %p734_p9 = pnand %p732_p8, %p729_p7 }
 0x67d   :  { %737 = shalt.err (!%p734_p9)
}
 0x67e   :  { %420 = dma.vmem_to_hbm [thread:$0]  %s418_s22, 128, %s867_s5, [#allocation4]  }
 0x67f   :  { %742 = dma.done.wait [#allocation4], 128  }
 0x680   :  { %743 = vsyncadd [#allocation4], 4294967168 }
 0x681   :  { %424 = vsyncpa [#allocation3], 1 }
 0x682   :  { %425 = vsyncpa [#allocation6], 1 }
 0x683   :  { %426 = vsyncpa [#allocation4], 1 }

</bundles_post_ra>
